<compile_context>
chip_gen: v7x
topology: tpu7x:2x2x1
jax: 0.10.0
libtpu: 0.0.40
codegen_flags: <defaults>
</compile_context>

<pallas_src>
import functools
import math

import jax
import jax.numpy as jnp
from jax.experimental import pallas as pl
from jax.experimental.pallas import tpu as pltpu


def _round_up(a, m):
    return (a + m - 1) // m * m


def _sublane_multiple(dtype):
    # f32 -> 8, bf16 -> 16, int8/fp8 -> 32 (packed-sublane friendly).
    return max(8, 32 // jnp.dtype(dtype).itemsize)


def _default_vmem_budget():
    cap = None
    try:
        info = pltpu.get_tpu_info()
        cap = getattr(info, "vmem_capacity_bytes", None)
    except Exception:
        cap = None
    if not cap or cap <= 0:
        cap = 64 * 1024 * 1024          # conservative: v7x has the smallest VMEM
    return min(int(cap * 0.7), 96 * 1024 * 1024)


# ---------------------------------------------------------------------------
# Kernels
# ---------------------------------------------------------------------------
def _conv1d_im2col_kernel(xa_ref, xb_ref, w_ref, b_ref, o_ref, slab_ref, *,
                          kernel_size, dilation, tile_l, c_in_p):
    """Low-channel path (C_in_p < 128): one deep MXU contraction over an
    im2col slab (fixes MXU under-fill; slab-build cost is small at low C_in).

    xa_ref:   (C_in_p, TILE)        current time tile of (padded) x
    xb_ref:   (C_in_p, HB)          right-halo columns after it
    w_ref:    (C_out_p, K*C_in_p)   im2col-flattened weights (resident)
    b_ref:    (C_out_p, 1)          f32 bias (resident)
    o_ref:    (C_out_p, TILE)       lane-dense output tile
    slab_ref: (K*C_in_p, TILE)      VMEM scratch for the im2col slab
    """
    for kk in range(kernel_size):
        off = kk * dilation
        row = kk * c_in_p
        if off == 0:
            slab_ref[row:row + c_in_p, :] = xa_ref[...]
        else:
            slab_ref[row:row + c_in_p, :tile_l - off] = xa_ref[:, off:]
            slab_ref[row:row + c_in_p, tile_l - off:] = xb_ref[:, :off]
    acc = jnp.dot(w_ref[...], slab_ref[...], preferred_element_type=jnp.float32)
    o_ref[...] = (acc + b_ref[...]).astype(o_ref.dtype)


def _conv1d_kdots_kernel(xa_ref, xb_ref, w_ref, b_ref, o_ref, *scratch,
                         kernel_size, dilation, tile_l):
    """High-channel path (C_in_p >= 128): K accumulating MXU dots.

    Tap 0 is contracted straight from xa_ref (no copy).  Taps 1..K-1 stage
    their shifted slice into a 2-slot scratch so the shift copy for tap k+1
    (vld/vst slots) can overlap tap k's matmul (vex slot) instead of a whole
    im2col slab build serializing against one dot.

    xa_ref:   (C_in_p, TILE)
    xb_ref:   (C_in_p, HB)
    w_ref:    (K, C_out_p, C_in_p)  per-tap weights (resident)
    b_ref:    (C_out_p, 1) f32
    o_ref:    (C_out_p, TILE)
    scratch:  [(2, C_in_p, TILE)] staging buffer when K > 1
    """
    acc = jnp.dot(w_ref[0], xa_ref[...], preferred_element_type=jnp.float32)
    if kernel_size > 1:
        stage_ref = scratch[0]
        for kk in range(1, kernel_size):
            off = kk * dilation
            slot = kk % 2
            stage_ref[slot, :, :tile_l - off] = xa_ref[:, off:]
            stage_ref[slot, :, tile_l - off:] = xb_ref[:, :off]
            acc = acc + jnp.dot(w_ref[kk], stage_ref[slot],
                                preferred_element_type=jnp.float32)
    o_ref[...] = (acc + b_ref[...]).astype(o_ref.dtype)


# ---------------------------------------------------------------------------
# Wrapper
# ---------------------------------------------------------------------------
def conv_norm_forward(x, weight, bias=None, *, stride=1, padding=None,
                      dilation=1, tile_l=None, compute_dtype=None,
                      vmem_budget_bytes=None):
    """ConvNorm.forward: 1d conv with 'same'-style default padding.

    x:       (N, C_in, L)
    weight:  (C_out, C_in, K)       (PyTorch Conv1d layout)
    bias:    (C_out,) or None
    tile_l:  optional time-tile width override (rounded to 128/halo multiples).
             Default: auto-sized from the VMEM budget.
    compute_dtype: MXU operand dtype (e.g. jnp.bfloat16). Accumulation is
             always f32; output keeps x.dtype.
    """
    n, c_in, l = x.shape
    c_out, c_in_w, k = weight.shape
    assert c_in_w == c_in
    if padding is None:
        assert k % 2 == 1
        padding = int(dilation * (k - 1) / 2)
    assert stride == 1, "ConvNorm default stride=1; only stride=1 implemented"

    out_dtype = x.dtype
    if compute_dtype is None:
        compute_dtype = x.dtype
    compute_dtype = jnp.dtype(compute_dtype)
    in_item = compute_dtype.itemsize
    out_item = jnp.dtype(out_dtype).itemsize

    l_out = (l + 2 * padding - dilation * (k - 1) - 1) // stride + 1
    halo = dilation * (k - 1)

    # ---- dtype-aware channel padding (sublane packing) ---------------------
    c_in_p = _round_up(c_in, _sublane_multiple(compute_dtype))
    c_out_p = _round_up(c_out, max(_sublane_multiple(compute_dtype),
                                   _sublane_multiple(out_dtype)))

    use_im2col = (c_in_p < 128) and (k > 1)
    scratch_factor = k if use_im2col else (2 if k > 1 else 0)

    # ---- VMEM budget / tile sizing -----------------------------------------
    if vmem_budget_bytes is None:
        vmem_budget_bytes = _default_vmem_budget()

    hb = max(128, _round_up(max(halo, 1), 128))      # width of the halo block

    def footprint(t):
        return (2 * c_in_p * t * in_item                  # xa, double-buffered
                + 2 * c_in_p * hb * in_item               # xb halo
                + 2 * k * c_in_p * c_out_p * in_item      # weights (assume 2 bufs)
                + 2 * c_out_p * 4                         # bias
                + 2 * c_out_p * t * out_item              # out, double-buffered
                + scratch_factor * c_in_p * t * in_item)  # slab / staging

    if tile_l is not None:
        tile = _round_up(min(tile_l, _round_up(max(l_out, 1), 128)), 128)
        tile = _round_up(tile, hb)
    else:
        per_col = ((2 + scratch_factor) * c_in_p * in_item
                   + 2 * c_out_p * out_item)
        avail = vmem_budget_bytes - footprint(0) - (2 << 20)   # 2 MiB headroom
        max_tile = max(hb, (avail // per_col) // hb * hb) if avail > 0 else hb
        t_hi = max(hb, min(max_tile, _round_up(min(max(l_out, 1), 2048), hb)))
        cands = list(range(hb, t_hi + 1, hb))
        big = [t for t in cands if t >= min(512, t_hi)]
        cands = big if big else cands
        # minimize output padding first, then prefer the largest tile
        tile = min(cands, key=lambda t: (_round_up(max(l_out, 1), t), -t))
    if tile <= halo:
        tile = _round_up(halo + 1, hb)

    l_out_p = _round_up(max(l_out, 1), tile)
    num_tiles = l_out_p // tile
    hb_per_tile = tile // hb

    vmem_limit = int(min(max(vmem_budget_bytes, footprint(tile) + (2 << 20)),
                         112 * 1024 * 1024))

    # ---- pad time once: 'same' left pad + enough on the right so every tile
    # and its halo block are in-bounds --------------------------------------
    l_xp = l_out_p + hb
    pad_left = padding
    pad_right = l_xp - l - pad_left
    assert pad_right >= 0
    # TODO(synk): do this zero-fill in-kernel to remove the HBM round trip.
    x_p = jnp.pad(x, ((0, 0), (0, c_in_p - c_in), (pad_left, pad_right)))
    x_p = x_p.astype(compute_dtype)

    # ---- weights / bias -----------------------------------------------------
    w_p = jnp.pad(weight, ((0, c_out_p - c_out), (0, c_in_p - c_in), (0, 0)))
    if use_im2col:
        # (C_out_p, K*C_in_p), column order [tap, chan]
        w_k = jnp.transpose(w_p, (0, 2, 1)).reshape(c_out_p, k * c_in_p)
        w_spec = pl.BlockSpec((c_out_p, k * c_in_p), lambda i, j: (0, 0))
    else:
        # (K, C_out_p, C_in_p): per-tap slices are leading-axis loads
        w_k = jnp.transpose(w_p, (2, 0, 1))
        w_spec = pl.BlockSpec((k, c_out_p, c_in_p), lambda i, j: (0, 0, 0))
    w_k = w_k.astype(compute_dtype)

    if bias is None:
        bias = jnp.zeros((c_out,), jnp.float32)
    b2d = jnp.pad(bias.astype(jnp.float32), (0, c_out_p - c_out)).reshape(c_out_p, 1)

    # ---- kernel / scratch selection -----------------------------------------
    if use_im2col:
        kernel = functools.partial(_conv1d_im2col_kernel, kernel_size=k,
                                   dilation=dilation, tile_l=tile, c_in_p=c_in_p)
        scratch_shapes = [pltpu.VMEM((k * c_in_p, tile), compute_dtype)]
    else:
        kernel = functools.partial(_conv1d_kdots_kernel, kernel_size=k,
                                   dilation=dilation, tile_l=tile)
        scratch_shapes = ([pltpu.VMEM((2, c_in_p, tile), compute_dtype)]
                          if k > 1 else [])

    out = pl.pallas_call(
        kernel,
        out_shape=jax.ShapeDtypeStruct((n, c_out_p, l_out_p), out_dtype),
        grid_spec=pltpu.PrefetchScalarGridSpec(
            num_scalar_prefetch=0,
            grid=(n, num_tiles),
            in_specs=[
                # current time tile of x (lane-dense, bounded VMEM)
                pl.BlockSpec((None, c_in_p, tile), lambda i, j: (i, 0, j)),
                # right halo: the hb columns immediately after this tile
                pl.BlockSpec((None, c_in_p, hb),
                             lambda i, j: (i, 0, (j + 1) * hb_per_tile)),
                # weights / bias: constant index_map -> fetched once, resident
                w_spec,
                pl.BlockSpec((c_out_p, 1), lambda i, j: (0, 0)),
            ],
            out_specs=pl.BlockSpec((None, c_out_p, tile), lambda i, j: (i, 0, j)),
            scratch_shapes=scratch_shapes,
        ),
        compiler_params=pltpu.CompilerParams(
            # both axes independent; v7x megacore can split time tiles too.
            # TODO(synk): evaluate pltpu.CORE_PARALLEL on the tile axis for
            # batch=1 v7x inference once verified on the installed version.
            dimension_semantics=("parallel", "parallel"),
            vmem_limit_bytes=vmem_limit,
        ),
    )(x_p, x_p, w_k, b2d)

    # TODO(synk): the trailing slice copies the padded output in HBM; fusing
    # the downstream BatchNorm/activation here would remove it entirely.
    return out[:, :c_out, :l_out]


# ---------------------------------------------------------------------------
# Init + reference + test
# ---------------------------------------------------------------------------
def init_conv_norm_params(key, in_channels, out_channels, kernel_size,
                          w_init_gain="linear"):
    """Xavier-uniform weight init (matching ConvNorm.__init__) + Conv1d bias init."""
    kw, kb = jax.random.split(key)
    gain = 1.0  # torch.nn.init.calculate_gain('linear') == 1.0
    fan_in = in_channels * kernel_size
    fan_out = out_channels * kernel_size
    bound_w = gain * math.sqrt(6.0 / (fan_in + fan_out))
    weight = jax.random.uniform(
        kw, (out_channels, in_channels, kernel_size),
        minval=-bound_w, maxval=bound_w, dtype=jnp.float32)
    bound_b = 1.0 / math.sqrt(fan_in)
    bias = jax.random.uniform(
        kb, (out_channels,), minval=-bound_b, maxval=bound_b, dtype=jnp.float32)
    return weight, bias


def _conv_ref(x, w, b, pad, dil):
    y = jax.lax.conv_general_dilated(
        x, w, window_strides=(1,), padding=[(pad, pad)], rhs_dilation=(dil,),
        dimension_numbers=("NCH", "OIH", "NCH"))
    return y + b.reshape(1, -1, 1)


if __name__ == "__main__":
    key = jax.random.PRNGKey(0)
    k1, k2, k3, k4 = jax.random.split(key, 4)

    # --- Small low-channel conv (im2col path), f32 --------------------------
    N, C_IN, C_OUT, L, K = 2, 4, 6, 16, 5
    x = jax.random.normal(k1, (N, C_IN, L), dtype=jnp.float32)
    weight, bias = init_conv_norm_params(k2, C_IN, C_OUT, K)

    y = jax.block_until_ready(conv_norm_forward(x, weight, bias))
    ref = _conv_ref(x, weight, bias, (K - 1) // 2, 1)
    assert y.shape == (N, C_OUT, L)
    assert jnp.allclose(y, ref, atol=1e-4, rtol=1e-4)

    # --- bf16-at-the-MXU path (f32 accumulation) -----------------------------
    y_bf16 = jax.block_until_ready(
        conv_norm_forward(x, weight, bias, compute_dtype=jnp.bfloat16))
    assert y_bf16.dtype == x.dtype
    assert jnp.allclose(y_bf16, ref, atol=5e-2, rtol=5e-2)

    # --- High-channel conv (K accumulating dots path), dilation=2 ------------
    N2, C_IN2, C_OUT2, L2, K2, DIL2 = 1, 128, 8, 32, 3, 2
    x2 = jax.random.normal(k3, (N2, C_IN2, L2), dtype=jnp.float32)
    w2, b2 = init_conv_norm_params(k4, C_IN2, C_OUT2, K2)
    pad2 = int(DIL2 * (K2 - 1) / 2)
    y2 = jax.block_until_ready(conv_norm_forward(x2, w2, b2, dilation=DIL2))
    ref2 = _conv_ref(x2, w2, b2, pad2, DIL2)
    assert y2.shape == (N2, C_OUT2, L2)
    assert jnp.allclose(y2, ref2, atol=1e-3, rtol=1e-3)

    print("KERNEL_OK")
</pallas_src>

<mosaic_0001>
module attributes {stable_mosaic.version = 11 : i64} {
  func.func @_conv1d_im2col_kernel(%arg0: i32, %arg1: i32, %arg2: memref<1x8x128xf32, #tpu.memory_space<vmem>>, %arg3: memref<1x8x128xf32, #tpu.memory_space<vmem>>, %arg4: memref<8x40xf32, #tpu.memory_space<vmem>>, %arg5: memref<8x1xf32, #tpu.memory_space<vmem>>, %arg6: memref<1x8x128xf32, #tpu.memory_space<vmem>>, %arg7: memref<40x128xf32, #tpu.memory_space<vmem>>) attributes {dimension_semantics = [#tpu.dimension_semantics<parallel>, #tpu.dimension_semantics<parallel>], iteration_bounds = array<i64: 2, 1>, scalar_prefetch = 0 : i64, scratch_operands = 1 : i64, tpu.core_type = #tpu.core_type<tc>, window_params = [{transform_indices = @transform_0, window_bounds = array<i64: 1, 8, 128>}, {transform_indices = @transform_1, window_bounds = array<i64: 1, 8, 128>}, {pipeline_mode = #tpu.pipeline_mode<synchronous>, transform_indices = @transform_2, window_bounds = array<i64: 8, 40>}, {pipeline_mode = #tpu.pipeline_mode<synchronous>, transform_indices = @transform_3, window_bounds = array<i64: 8, 1>}, {transform_indices = @transform_4, window_bounds = array<i64: 1, 8, 128>}]} {
    %c0 = arith.constant 0 : index
    %c0_0 = arith.constant 0 : index
    %c0_1 = arith.constant 0 : index
    %0 = vector.load %arg2[%c0, %c0_0, %c0_1] : memref<1x8x128xf32, #tpu.memory_space<vmem>>, vector<1x8x128xf32>
    %1 = vector.shape_cast %0 : vector<1x8x128xf32> to vector<8x128xf32>
    %c0_2 = arith.constant 0 : index
    %c0_3 = arith.constant 0 : index
    %2 = vector.load %arg7[%c0_2, %c0_3] : memref<40x128xf32, #tpu.memory_space<vmem>>, vector<8x128xf32>
    tpu.vector_store %arg7[%c0_2, %c0_3], %1 {strides = array<i32>} : memref<40x128xf32, #tpu.memory_space<vmem>>, vector<8x128xf32>,
    %c0_4 = arith.constant 0 : index
    %c0_5 = arith.constant 0 : index
    %c1 = arith.constant 1 : index
    %3 = vector.load %arg2[%c0_4, %c0_5, %c1] : memref<1x8x128xf32, #tpu.memory_space<vmem>>, vector<1x8x127xf32>
    %4 = vector.shape_cast %3 : vector<1x8x127xf32> to vector<8x127xf32>
    %c8 = arith.constant 8 : index
    %c0_6 = arith.constant 0 : index
    %5 = vector.load %arg7[%c8, %c0_6] : memref<40x128xf32, #tpu.memory_space<vmem>>, vector<8x127xf32>
    tpu.vector_store %arg7[%c8, %c0_6], %4 {strides = array<i32>} : memref<40x128xf32, #tpu.memory_space<vmem>>, vector<8x127xf32>,
    %c0_7 = arith.constant 0 : index
    %c0_8 = arith.constant 0 : index
    %c0_9 = arith.constant 0 : index
    %6 = vector.load %arg3[%c0_7, %c0_8, %c0_9] : memref<1x8x128xf32, #tpu.memory_space<vmem>>, vector<1x8x1xf32>
    %7 = vector.shape_cast %6 : vector<1x8x1xf32> to vector<8x1xf32>
    %c8_10 = arith.constant 8 : index
    %c127 = arith.constant 127 : index
    %8 = vector.load %arg7[%c8_10, %c127] : memref<40x128xf32, #tpu.memory_space<vmem>>, vector<8x1xf32>
    tpu.vector_store %arg7[%c8_10, %c127], %7 {strides = array<i32>} : memref<40x128xf32, #tpu.memory_space<vmem>>, vector<8x1xf32>,
    %c0_11 = arith.constant 0 : index
    %c0_12 = arith.constant 0 : index
    %c2 = arith.constant 2 : index
    %9 = vector.load %arg2[%c0_11, %c0_12, %c2] : memref<1x8x128xf32, #tpu.memory_space<vmem>>, vector<1x8x126xf32>
    %10 = vector.shape_cast %9 : vector<1x8x126xf32> to vector<8x126xf32>
    %c16 = arith.constant 16 : index
    %c0_13 = arith.constant 0 : index
    %11 = vector.load %arg7[%c16, %c0_13] : memref<40x128xf32, #tpu.memory_space<vmem>>, vector<8x126xf32>
    tpu.vector_store %arg7[%c16, %c0_13], %10 {strides = array<i32>} : memref<40x128xf32, #tpu.memory_space<vmem>>, vector<8x126xf32>,
    %c0_14 = arith.constant 0 : index
    %c0_15 = arith.constant 0 : index
    %c0_16 = arith.constant 0 : index
    %12 = vector.load %arg3[%c0_14, %c0_15, %c0_16] : memref<1x8x128xf32, #tpu.memory_space<vmem>>, vector<1x8x2xf32>
    %13 = vector.shape_cast %12 : vector<1x8x2xf32> to vector<8x2xf32>
    %c16_17 = arith.constant 16 : index
    %c126 = arith.constant 126 : index
    %14 = vector.load %arg7[%c16_17, %c126] : memref<40x128xf32, #tpu.memory_space<vmem>>, vector<8x2xf32>
    tpu.vector_store %arg7[%c16_17, %c126], %13 {strides = array<i32>} : memref<40x128xf32, #tpu.memory_space<vmem>>, vector<8x2xf32>,
    %c0_18 = arith.constant 0 : index
    %c0_19 = arith.constant 0 : index
    %c3 = arith.constant 3 : index
    %15 = vector.load %arg2[%c0_18, %c0_19, %c3] : memref<1x8x128xf32, #tpu.memory_space<vmem>>, vector<1x8x125xf32>
    %16 = vector.shape_cast %15 : vector<1x8x125xf32> to vector<8x125xf32>
    %c24 = arith.constant 24 : index
    %c0_20 = arith.constant 0 : index
    %17 = vector.load %arg7[%c24, %c0_20] : memref<40x128xf32, #tpu.memory_space<vmem>>, vector<8x125xf32>
    tpu.vector_store %arg7[%c24, %c0_20], %16 {strides = array<i32>} : memref<40x128xf32, #tpu.memory_space<vmem>>, vector<8x125xf32>,
    %c0_21 = arith.constant 0 : index
    %c0_22 = arith.constant 0 : index
    %c0_23 = arith.constant 0 : index
    %18 = vector.load %arg3[%c0_21, %c0_22, %c0_23] : memref<1x8x128xf32, #tpu.memory_space<vmem>>, vector<1x8x3xf32>
    %19 = vector.shape_cast %18 : vector<1x8x3xf32> to vector<8x3xf32>
    %c24_24 = arith.constant 24 : index
    %c125 = arith.constant 125 : index
    %20 = vector.load %arg7[%c24_24, %c125] : memref<40x128xf32, #tpu.memory_space<vmem>>, vector<8x3xf32>
    tpu.vector_store %arg7[%c24_24, %c125], %19 {strides = array<i32>} : memref<40x128xf32, #tpu.memory_space<vmem>>, vector<8x3xf32>,
    %c0_25 = arith.constant 0 : index
    %c0_26 = arith.constant 0 : index
    %c4 = arith.constant 4 : index
    %21 = vector.load %arg2[%c0_25, %c0_26, %c4] : memref<1x8x128xf32, #tpu.memory_space<vmem>>, vector<1x8x124xf32>
    %22 = vector.shape_cast %21 : vector<1x8x124xf32> to vector<8x124xf32>
    %c32 = arith.constant 32 : index
    %c0_27 = arith.constant 0 : index
    %23 = vector.load %arg7[%c32, %c0_27] : memref<40x128xf32, #tpu.memory_space<vmem>>, vector<8x124xf32>
    tpu.vector_store %arg7[%c32, %c0_27], %22 {strides = array<i32>} : memref<40x128xf32, #tpu.memory_space<vmem>>, vector<8x124xf32>,
    %c0_28 = arith.constant 0 : index
    %c0_29 = arith.constant 0 : index
    %c0_30 = arith.constant 0 : index
    %24 = vector.load %arg3[%c0_28, %c0_29, %c0_30] : memref<1x8x128xf32, #tpu.memory_space<vmem>>, vector<1x8x4xf32>
    %25 = vector.shape_cast %24 : vector<1x8x4xf32> to vector<8x4xf32>
    %c32_31 = arith.constant 32 : index
    %c124 = arith.constant 124 : index
    %26 = vector.load %arg7[%c32_31, %c124] : memref<40x128xf32, #tpu.memory_space<vmem>>, vector<8x4xf32>
    tpu.vector_store %arg7[%c32_31, %c124], %25 {strides = array<i32>} : memref<40x128xf32, #tpu.memory_space<vmem>>, vector<8x4xf32>,
    %c0_32 = arith.constant 0 : index
    %c0_33 = arith.constant 0 : index
    %27 = vector.load %arg4[%c0_32, %c0_33] : memref<8x40xf32, #tpu.memory_space<vmem>>, vector<8x40xf32>
    %c0_34 = arith.constant 0 : index
    %c0_35 = arith.constant 0 : index
    %28 = vector.load %arg7[%c0_34, %c0_35] : memref<40x128xf32, #tpu.memory_space<vmem>>, vector<40x128xf32>
    %cst = arith.constant dense<0.000000e+00> : vector<8x128xf32>
    %29 = tpu.matmul %27, %28, %cst {dimension_numbers = #tpu.dot_dimension_numbers<[1], [0], [0], [1], [0, 0, 1, 1], [], []>} : vector<8x40xf32>, vector<40x128xf32>, vector<8x128xf32> -> vector<8x128xf32>
    %c0_36 = arith.constant 0 : index
    %c0_37 = arith.constant 0 : index
    %30 = vector.load %arg5[%c0_36, %c0_37] : memref<8x1xf32, #tpu.memory_space<vmem>>, vector<8x1xf32>
    %31 = vector.broadcast %30 : vector<8x1xf32> to vector<8x128xf32>
    %32 = arith.addf %29, %31 : vector<8x128xf32>
    %c0_38 = arith.constant 0 : index
    %c0_39 = arith.constant 0 : index
    %c0_40 = arith.constant 0 : index
    %33 = vector.load %arg6[%c0_38, %c0_39, %c0_40] : memref<1x8x128xf32, #tpu.memory_space<vmem>>, vector<1x8x128xf32>
    %34 = vector.shape_cast %33 : vector<1x8x128xf32> to vector<8x128xf32>
    %35 = vector.shape_cast %32 : vector<8x128xf32> to vector<1x8x128xf32>
    tpu.vector_store %arg6[%c0_38, %c0_39, %c0_40], %35 {strides = array<i32>} : memref<1x8x128xf32, #tpu.memory_space<vmem>>, vector<1x8x128xf32>,
    return
  }
  func.func @transform_0(%arg0: i32, %arg1: i32) -> (i32, i32, i32) {
    %c0_i32 = arith.constant 0 : i32
    %c0_i32_0 = arith.constant 0 : i32
    return %arg0, %c0_i32, %arg1 : i32, i32, i32
  }
  func.func @transform_1(%arg0: i32, %arg1: i32) -> (i32, i32, i32) {
    %c1_i32 = arith.constant 1 : i32
    %0 = arith.addi %arg1, %c1_i32 : i32
    %c1_i32_0 = arith.constant 1 : i32
    %1 = arith.muli %0, %c1_i32_0 : i32
    %c0_i32 = arith.constant 0 : i32
    %c0_i32_1 = arith.constant 0 : i32
    return %arg0, %c0_i32, %1 : i32, i32, i32
  }
  func.func @transform_2(%arg0: i32, %arg1: i32) -> (i32, i32) {
    %c0_i32 = arith.constant 0 : i32
    %c0_i32_0 = arith.constant 0 : i32
    %c0_i32_1 = arith.constant 0 : i32
    return %c0_i32, %c0_i32_0 : i32, i32
  }
  func.func @transform_3(%arg0: i32, %arg1: i32) -> (i32, i32) {
    %c0_i32 = arith.constant 0 : i32
    %c0_i32_0 = arith.constant 0 : i32
    %c0_i32_1 = arith.constant 0 : i32
    return %c0_i32, %c0_i32_0 : i32, i32
  }
  func.func @transform_4(%arg0: i32, %arg1: i32) -> (i32, i32, i32) {
    %c0_i32 = arith.constant 0 : i32
    %c0_i32_0 = arith.constant 0 : i32
    return %arg0, %c0_i32, %arg1 : i32, i32, i32
  }
}

</mosaic_0001>

<bundles_post_ra>
// kernel: tpu_custom_call.1
= control target key start
LH: loop header
LB: loop body
LE: loop exit
PB: predicated region body
PF: predicated region fallthrough
CT: control target
= control target key end

     0   :  { %9 = vsyncpa [#allocation4], 0  ;;  %s1080_s0 = inlined_call_operand.hbm [shape: f32[2,8,256], index: 0, kind: input, shape index: {}]   ;;  %s1081_s1 = inlined_call_operand.hbm [shape: f32[2,8,256], index: 1, kind: input, shape index: {}]   ;;  %s1082_s2 = inlined_call_operand.vmem [shape: f32[8,40], index: 2, kind: input, shape index: {}]   ;;  %s1083_s3 = inlined_call_operand.vmem [shape: f32[8,1], index: 3, kind: input, shape index: {}]   ;;  %s1084_s4 = inlined_call_operand.hbm [shape: f32[2,8,128], index: 4, kind: output, shape index: {}]  }
   0x1   :  { %11 = vsyncpa [#allocation4 + $0x1], 0 }
   0x2   :  { %12 = vsyncpa [#allocation7], 0 }
   0x3   :  { %14 = vsyncpa [#allocation7 + $0x1], 0 }
   0x4   :  { %15 = vsyncpa [#allocation5], 0 }
   0x5   :  { %17 = vsyncpa [#allocation5 + $0x1], 0  ;;  %s850_s15 = smov 0   ;;  %s852_s16 = smov 0  }
   0x6   :  { %s854_s17 = smov 0   ;;  %s856_s18 = smov 0  }
   0x7   :  { %s858_s19 = smov 0   ;;  %s860_s20 = smov 0  }
   0x8 LB: > { %s543_s21 = sadd.s32 4294967295, %s812_s20   ;;  %s544_s22 = sadd.s32 4294967294, %s812_s20   ;;  %s812_s20 = sphi %s860_s20, %s23_s20   ;;  %s808_s19 = sphi %s858_s19, %s1104_s19   ;;  %s804_s18 = sphi %s856_s18, %s1103_s18   ;;  %s800_s17 = sphi %s854_s17, %s1102_s17   ;;  %s796_s16 = sphi %s852_s16, %s1101_s16   ;;  %s792_s15 = sphi %s850_s15, %s1100_s15  }
   0x9   : > { %s35_s23 = sadd.s32 1, %s808_s19  ;;  %s44_s24 = sadd.s32 1, %s800_s17 }
   0xa   : > { %p37_p0 = scmp.ge.s32.totalorder %s35_s23, 2  ;;  %p51_p1 = scmp.ne.s32.totalorder %s800_s17, %s796_s16 }
   0xb   : > { %p52_p2 = scmp.eq.s32.totalorder %s812_s20, 0  ;;  %p57_p3 = scmp.ne.s32.totalorder %s796_s16, %s792_s15 }
   0xc   : > { %s1106_s23 = smov (%p37_p0, %s35_s23), 0  ;;  %p58_p5 = scmp.eq.s32.totalorder %s543_s21, 0 }
   0xd   : > { %p891_p4 = por %p52_p2, %p51_p1  ;;  %s39_s26 = ssub.s32 %s808_s19, %s1106_s23 }
   0xe   : > { %p155_p6 = scmp.eq.s32.totalorder %s543_s21, 1  ;;  %p42_p7 = scmp.eq.s32.totalorder %s39_s26, 0 }
   0xf   : > { %p897_p8 = por %p58_p5, %p57_p3  ;;  %p161_p10 = scmp.eq.s32.totalorder %s544_s22, 1 }
  0x10   : > { %p901_p9 = por %p155_p6, %p51_p1  ;;  %p606_p13 = scmp.lt.s32.totalorder %s812_s20, 2 }
  0x11   : > { %s1088_s27 = scalar_select %p897_p8, 1, 0 }
  0x12   : > { %s1089_s28 = scalar_select %p901_p9, 1, 0 }
  0x13   : > { %s906_s29 = scalar_select %p42_p7, %s800_s17, %s44_s24  }
  0x14   : > { %p908_p11 = por %p161_p10, %p57_p3  ;;  %s915_s5 = sand.u32 1, %s800_s17  }
  0x15   : > { %s547_s6 = sshll.u32 %s915_s5, 3  ;;  %s562_s7 = sshll.u32 %s808_s19, 8 }
  0x16   : > { %s1090_s30 = scalar_select %p908_p11, 1, 0 }
  0x17   : > { %s924_s10 = scalar_lea.hbm %s1080_s0, %s562_s7  ;;  %s191_s11 = scalar_lea.vmem [#allocation3], %s547_s6 }
  0x18   : > { %s200_s12 = sshll.u32 %s191_s11, 4  ;;  %p932_p0 = pnand %p606_p13, %p891_p4  ;;  %s928_s12 = int_to_ptr.vmem [resolvable:$true] %s200_s12 }
  0x19   : > { %s188_s14 = scalar_lea.sflag [#allocation4], %s915_s5  ;;  %s665_s21 = scalar_lea.hbm %s924_s10, 128 }
  0x1a   : > { %p666_p3 = scmp.ne.s32.totalorder %s924_s10, %s665_s21  ;;  %p667_p5 = pneg %p932_p0 }
  0x1b   : > { %s670_s25 = scalar_lea.hbm %s1080_s0, 512  ;;  %p671_p4 = scmp.lt.u32.totalorder %s924_s10, %s1080_s0 }
  0x1c   : > { %p668_p6 = pnand %p667_p5, %p666_p3  ;;  %p672_p10 = scmp.lt.u32.totalorder %s670_s25, %s665_s21 }
  0x1d   : > { %p674_p12 = scmp.lt.u32.totalorder %s665_s21, %s924_s10 }
  0x1e   : > { %p669_p7 = pneg %p668_p6  ;;  %p673_p13 = por %p672_p10, %p671_p4 }
  0x20   : > { %p675_p1 = por %p674_p12, %p673_p13 }
  0x22   : > { %p676_p2 = pnand %p675_p1, %p669_p7 }
  0x24   : > { %679 = shalt.err (!%p676_p2)
}
  0x25   : > { %s680_s9 = scalar_lea.vmem %s928_s12, 128  ;;  %s814_s11 = smov [#allocation3]  }
  0x26   : > { %p681_p3 = scmp.ne.s32.totalorder %s928_s12, %s680_s9  ;;  %s685_s22 = sshll.u32 %s814_s11, 4  ;;  %s686_s22 = int_to_ptr.vmem [resolvable:$false] %s685_s22 }
  0x27   : > { %s687_s24 = scalar_lea.vmem %s686_s22, 256  ;;  %p688_p9 = scmp.lt.s32.totalorder %s928_s12, %s686_s22 }
  0x28   : > { %p683_p6 = pnand %p681_p3, %p667_p5  ;;  %p689_p4 = scmp.lt.s32.totalorder %s687_s24, %s680_s9 }
  0x2a   : > { %p684_p11 = pneg %p683_p6  ;;  %p690_p10 = por %p689_p4, %p688_p9 }
  0x2c   : > { %p691_p12 = pnand %p690_p10, %p684_p11 }
  0x2e   : > { %694 = shalt.err (!%p691_p12)
}
  0x2f   : > { %598 = dma.hbm_to_vmem [thread:$0]  (!%p932_p0), %s924_s10, 128, %s928_s12, %s188_s14  }
  0x30   : > { %p1092_p1 = scmp.lt.s32.totalorder %s812_s20, 3  ;;  %p1093_p2 = scmp.ge.s32.totalorder %s812_s20, 1 }
  0x31   : > { %s476_s8 = scalar_lea.hbm %s1081_s1, %s562_s7  ;;  %s211_s9 = scalar_lea.vmem [#allocation6], %s547_s6 }
  0x32   : > { %p968_p7 = pnand %p1093_p2, %p1092_p1  ;;  %s221_s11 = sshll.u32 %s211_s9, 4  ;;  %s222_s11 = int_to_ptr.vmem [resolvable:$true] %s221_s11 }
  0x33   : > { %s979_s22 = scalar_lea.hbm %s476_s8, 128  ;;  %s208_s10 = scalar_lea.sflag [#allocation7], %s915_s5 }
  0x34   : > { %s1094_s21 = scalar_select %p968_p7, 1, 0 }
  0x35   : > { %s725_s12 = scalar_lea.hbm %s476_s8, 256  ;;  %s700_s7 = scalar_lea.hbm %s1081_s1, 512 }
  0x36   : > { %p696_p9 = scmp.ne.s32.totalorder %s979_s22, %s725_s12  ;;  %p701_p3 = scmp.lt.u32.totalorder %s979_s22, %s1081_s1 }
  0x37   : > { %p702_p6 = scmp.lt.u32.totalorder %s700_s7, %s725_s12  ;;  %p704_p10 = scmp.lt.u32.totalorder %s725_s12, %s979_s22 }
  0x38   : > { %p698_p11 = pnand %p696_p9, %p667_p5 }
  0x39   : > { %p703_p4 = por %p702_p6, %p701_p3 }
  0x3a   : > { %p699_p13 = pneg %p698_p11 }
  0x3b   : > { %p705_p12 = por %p704_p10, %p703_p4 }
  0x3d   : > { %p706_p1 = pnand %p705_p12, %p699_p13 }
  0x3f   : > { %709 = shalt.err (!%p706_p1)
}
  0x40   : > { %s710_s5 = scalar_lea.vmem %s222_s11, 128  ;;  %s815_s26 = smov [#allocation6]  }
  0x41   : > { %p711_p2 = scmp.ne.s32.totalorder %s222_s11, %s710_s5  ;;  %s715_s8 = sshll.u32 %s815_s26, 4  ;;  %s716_s8 = int_to_ptr.vmem [resolvable:$false] %s715_s8 }
  0x42   : > { %s717_s9 = scalar_lea.vmem %s716_s8, 256  ;;  %p718_p8 = scmp.lt.s32.totalorder %s222_s11, %s716_s8 }
  0x43   : > { %p713_p9 = pnand %p711_p2, %p667_p5  ;;  %p719_p7 = scmp.lt.s32.totalorder %s717_s9, %s710_s5 }
  0x45   : > { %p714_p11 = pneg %p713_p9  ;;  %p720_p3 = por %p719_p7, %p718_p8 }
  0x47   : > { %p721_p6 = pnand %p720_p3, %p714_p11 }
  0x49   : > { %724 = shalt.err (!%p721_p6)
}
  0x4a   : > { %601 = dma.hbm_to_vmem [thread:$0]  (!%p932_p0), %s979_s22, 128, %s222_s11, %s208_s10  }
  0x4b   : > { %p1095_p13 = scmp.ne.s32.totalorder %s1094_s21, 0 }
  0x4c   : > { %s1003_s12 = sand.u32 (!%p1095_p13), 1, %s796_s16   ;;  %p1096_p8 = scmp.ne.s32.totalorder (!%p1095_p13), %s1088_s27, 0 }
  0x4d   : > { %230 = sbr.rel (%p1095_p13) target bundleno = 455 (0x1c7), region = 36  ;;  %s1006_s14 = sshll.u32 (!%p1095_p13), %s1003_s12, 3 }
  0x4e   : > { %s233_s24 = scalar_lea.sflag (!%p1095_p13), [#allocation4], %s1003_s12  ;;  %s236_s7 = scalar_lea.vmem (!%p1095_p13), [#allocation3], %s1006_s14 }
  0x54   : > { %779 = dma.done.wait (%p1096_p8), %s233_s24, 128  }
  0x55   : > { %781 = vsyncadd (%p1096_p8), %s233_s24, 4294967168  ;;  %s242_s13 = scalar_lea.sflag [#allocation7], %s1003_s12  ;;  %s245_s21 = scalar_lea.vmem [#allocation6], %s1006_s14 }
  0x56   : > { %783 = dma.done.wait (%p1096_p8), %s242_s13, 128  }
  0x57   : > { %785 = vsyncadd (%p1096_p8), %s242_s13, 4294967168  ;;  %v292_v0 = vld [vmem:[%s236_s7] sm:$0xff]  ;;  %s816_s11 = smov 126   ;;  %s817_s22 = smov 127   ;;  %v285_v1 = vld [vmem:[%s245_s21] sm:$0xff]  ;;  %v818_v2 = vmov 0.0|0.0  }
  0x58   : > { %294 = vrot.lane.b32.xlu1 %v292_v0, %s816_s11  ;;  %280 = vrot.lane.b32.xlu0 %v292_v0, %s817_s22  ;;  %s819_s10 = smov 125   ;;  %vm820_vm0 = vmmov 0   ;;  %v821_v3 = vmov 0.0   ;;  %v822_v4 = vmov 0   ;;  %s823_s27 = smov 124   ;;  %v340_v5 = vld [vmem:[%s1083_s3] sm:$0xff] }
  0x59   : > { %583 = vmatprep.subr.bf16.mxu0 %v818_v2  ;;  %580 = vmatprep.mubr.msk.f32.mxu0 %vm820_vm0, %v821_v3  ;;  %vm297_vm1 = vcmask 1031168   ;;  %vm283_vm2 = vcmask 1039360   ;;  %vm311_vm3 = vcmask 1022976   ;;  %vm290_vm4 = vcmask 1048568   ;;  %v334_v20 = vld [vmem:[%s1082_s2] sm:$0xff]  ;;  %s559_s8 = sshll.u32 %s804_s18, 7 }
  0x5a   : > { %664 = vset.pattern.permute.xlu0 %v822_v4  ;;  %vm318_vm5 = vcmask 1048552   ;;  %vm304_vm6 = vcmask 1048560   ;;  %vm325_vm7 = vcmask 1014784   ;;  %vm332_vm8 = vcmask 1048544   ;;  %s274_s9 = scalar_lea.vmem [#allocation8], %s1006_s14  ;;  %s1031_s21 = scalar_lea.hbm %s1084_s4, %s559_s8 }
  0x5b   : > { %vm346_vm9 = vcmask 326656   ;;  %s436_s24 = sshll.u32 %s274_s9, 4  ;;  %p1097_p5 = scmp.ne.s32.totalorder %s1089_s28, 0  ;;  %s1033_s24 = int_to_ptr.vmem [resolvable:$true] %s436_s24 }
  0x5c   : > { %308 = vrot.lane.b32.xlu1 %v292_v0, %s819_s10  ;;  %287 = vrot.lane.b32.xlu0 %v285_v1, %s817_s22  ;;  %s726_s22 = scalar_lea.vmem %s1033_s24, 128  ;;  %s824_s18 = smov [#allocation8]  }
  0x5d   : > { %p727_p0 = scmp.ne.s32.totalorder %s1033_s24, %s726_s22  ;;  %s730_s14 = sshll.u32 %s824_s18, 4  ;;  %s731_s14 = int_to_ptr.vmem [resolvable:$false] %s730_s14 }
  0x5e   : > { %p733_p10 = scmp.lt.s32.totalorder %s1033_s24, %s731_s14 }
  0x5f   : > { %p728_p7 = pnand %p727_p0, %p1097_p5 }
  0x60   : > { %315 = vrot.lane.b32.xlu1 %v285_v1, %s819_s10  ;;  %301 = vrot.lane.b32.xlu0 %v285_v1, %s816_s11  ;;  %s422_s11 = scalar_lea.sflag [#allocation5], %s1003_s12  ;;  %s732_s10 = scalar_lea.vmem %s731_s14, 256 }
  0x61   : > { %p729_p4 = pneg %p728_p7  ;;  %p734_p12 = scmp.lt.s32.totalorder %s732_s10, %s726_s22 }
  0x63   : > { %p735_p1 = por %p734_p12, %p733_p10 }
  0x64   : > { %322 = vrot.lane.b32.xlu0 %v292_v0, %s823_s27  ;;  %329 = vrot.lane.b32.xlu1 %v285_v1, %s823_s27 }
  0x65   : > { %p736_p2 = pnand %p735_p1, %p729_p4 }
  0x68   : > { %343 = vperm.xlu0 %664, %v340_v5  }
  0xca   : > { %v295_v6 = vpop.permute.xlu1 %294  ;;  %v281_v7 = vpop.permute.xlu0 %280 }
  0xcb   : > { %298 = vst.msk [vmem:[#allocation2 + $0x10] sm:$0xff] %vm297_vm1, %v295_v6 }
  0xcc   : > { %284 = vst.msk [vmem:[#allocation2 + $0x8] sm:$0xff] %vm283_vm2, %v281_v7 }
  0xce   : > { %v309_v8 = vpop.permute.xlu1 %308  ;;  %v288_v9 = vpop.permute.xlu0 %287 }
  0xcf   : > { %312 = vst.msk [vmem:[#allocation2 + $0x18] sm:$0xff] %vm311_vm3, %v309_v8 }
  0xd0   : > { %291 = vst.msk [vmem:[#allocation2 + $0x8] sm:$0xff] %vm290_vm4, %v288_v9 }
  0xd2   : > { %v316_v10 = vpop.permute.xlu1 %315  ;;  %v302_v11 = vpop.permute.xlu0 %301 }
  0xd3   : > { %319 = vst.msk [vmem:[#allocation2 + $0x18] sm:$0xff] %vm318_vm5, %v316_v10 }
  0xd4   : > { %305 = vst.msk [vmem:[#allocation2 + $0x10] sm:$0xff] %vm304_vm6, %v302_v11 }
  0xd6   : > { %v323_v12 = vpop.permute.xlu0 %322  ;;  %v330_v13 = vpop.permute.xlu1 %329 }
  0xd7   : > { %v336_v14 = vld [vmem:[#allocation2 + $0x8] sm:$0xff]  ;;  %326 = vst.msk [vmem:[#allocation2 + $0x20] sm:$0xff] %vm325_vm7, %v323_v12 }
  0xd8   : > { %v584_v15 = vpack.c.bf16 %v336_v14, %v292_v0  ;;  %333 = vst.msk [vmem:[#allocation2 + $0x20] sm:$0xff] %vm332_vm8, %v330_v13 }
  0xda   : > { %585 = vmatpush3.bf16.msra.mxu0 %v584_v15  ;;  %v338_v17 = vld [vmem:[#allocation2 + $0x18] sm:$0xff] }
  0xdb   : > { %586 = vmatprep.subr.bf16.mxu0 %v818_v2  ;;  %v337_v16 = vld [vmem:[#allocation2 + $0x10] sm:$0xff] }
  0xdc   : > { %v587_v18 = vpack.c.bf16 %v338_v17, %v337_v16 }
  0xde   : > { %588 = vmatpush3.bf16.msra.mxu0 %v587_v18 }
  0xdf   : > { %578 = vmatprep.subr.mxu0 %v821_v3  ;;  %v339_v19 = vld [vmem:[#allocation2 + $0x20] sm:$0xff] }
  0xe2   : > { %579 = vmatpush3.msra.mxu0 %v339_v19 }
  0xe3   : > { %581 = vmatmul.mubr.msk.f32.vlgmr.msra.gmra.mrb[0].mxu0 %vm346_vm9, %v334_v20 }
  0xe7   : > { %v344_v21 = vpop.permute.xlu0 %343 }
 0x1b6   : > { %v416_v22 = vpop.f32.mrb[0].mxu0 }
 0x1b7   : > { %v417_v23 = vadd.f32 %v416_v22, %v344_v21  ;;  %v582_v24 = vpop.f32.mrb[1].mxu0 }
 0x1b9   : > { %420 = vst [vmem:[%s274_s9] sm:$0xff] %v417_v23 }
 0x1ba   : > { %739 = shalt.err (!%p736_p2)
}
 0x1bb   : > { %s740_s12 = scalar_lea.hbm %s1031_s21, 128  ;;  %s744_s6 = scalar_lea.hbm %s1084_s4, 256 }
 0x1bc   : > { %p741_p9 = scmp.ne.s32.totalorder %s1031_s21, %s740_s12  ;;  %p745_p6 = scmp.lt.u32.totalorder %s1031_s21, %s1084_s4 }
 0x1bd   : > { %p746_p13 = scmp.lt.u32.totalorder %s744_s6, %s740_s12  ;;  %p748_p0 = scmp.lt.u32.totalorder %s740_s12, %s1031_s21 }
 0x1be   : > { %p742_p11 = pnand %p741_p9, %p1097_p5 }
 0x1bf   : > { %p747_p8 = por %p746_p13, %p745_p6 }
 0x1c0   : > { %p743_p3 = pneg %p742_p11 }
 0x1c1   : > { %p749_p7 = por %p748_p0, %p747_p8 }
 0x1c3   : > { %p750_p4 = pnand %p749_p7, %p743_p3 }
 0x1c5   : > { %753 = shalt.err (!%p750_p4)
}
 0x1c6   : > { %593 = dma.vmem_to_hbm [thread:$0]  (%p1097_p5), %s1033_s24, 128, %s1031_s21, %s422_s11  }
 0x1c7 PF: > { %s448_s8 = sand.u32 1, %s792_s15   ;;  %p1098_p10 = scmp.ne.s32.totalorder %s1090_s30, 0 }
 0x1c8   : > { %p1099_p12 = scmp.ge.s32.totalorder %s812_s20, 2  ;;  %s449_s9 = scalar_lea.sflag [#allocation5], %s448_s8 }
 0x1ca   : > { %p603_p1 = pnand %p1099_p12, %p1098_p10 }
 0x1cc   : > { %787 = dma.done.wait (!%p603_p1), %s449_s9, 128  }
 0x1cd   : > { %789 = vsyncadd (!%p603_p1), %s449_s9, 4294967168  ;;  %s23_s20 = sadd.s32 1, %s812_s20   ;;  %s1100_s15 = smov %s796_s16 }
 0x1ce   : > { %p20_p2 = scmp.ge.s32.totalorder %s23_s20, 4   ;;  %s1101_s16 = smov %s800_s17 }
 0x1cf   : > { %s1102_s17 = smov %s906_s29  ;;  %s1103_s18 = smov %s808_s19 }
 0x1d0   : > { %s1104_s19 = smov %s1106_s23  ;;  %22 = sbr.rel (!%p20_p2) target bundleno = 8 (0x8), region = 94 }
 0x1d7   :  { %454 = vsyncpa [#allocation4], 1 }
 0x1d8   :  { %456 = vsyncpa [#allocation4 + $0x1], 1 }
 0x1d9   :  { %457 = vsyncpa [#allocation7], 1 }
 0x1da   :  { %459 = vsyncpa [#allocation7 + $0x1], 1 }
 0x1db   :  { %460 = vsyncpa [#allocation5], 1 }
 0x1dc   :  { %462 = vsyncpa [#allocation5 + $0x1], 1 }

</bundles_post_ra>
